<compile_context>
chip_gen: v6e
topology: v6e:2x2x1
jax: 0.10.0
libtpu: 0.0.40
codegen_flags: <defaults>
</compile_context>

<pallas_src>
import jax
import jax.numpy as jnp
from jax.experimental import pallas as pl
from jax.experimental.pallas import tpu as pltpu


def _round_up(x, m):
    return ((x + m - 1) // m) * m


def _cdiv(a, b):
    return -(-a // b)


def _spatial_attention_kernel(x_ref, w_ref, b_ref, o_ref):
    # x_ref: (C, T_HW) native dtype   w_ref: (C, 1) f32   b_ref: (1,) f32 SMEM
    # o_ref: (C, T_HW)
    x = x_ref[...]                                  # (C, T_HW)
    w = w_ref[...].astype(x.dtype)                  # (C, 1), multiply in native dtype
    bias = b_ref[0]                                 # scalar f32

    # 1x1 conv over channels: per-lane multiply, sublane-axis reduce, f32 accumulate.
    act = jnp.sum(x * w, axis=0, keepdims=True, dtype=jnp.float32) + bias  # (1, T_HW) f32

    # Gate multiply in the native dtype; (1, T_HW) broadcasts along sublanes.
    o_ref[...] = (x * act.astype(x.dtype)).astype(o_ref.dtype)


def spatial_attention(x_nchw, weight, bias, *, target_block_bytes=4 * 1024 * 1024):
    """x_nchw: (B, C, H, W); weight: (1, C, 1, 1); bias: (1,)."""
    B, C, H, W = x_nchw.shape
    HW = H * W

    # Free reshape: NCHW is already (B, C, HW)-contiguous. No transposes, no pad.
    x_flat = x_nchw.reshape(B, C, HW)

    itemsize = jnp.dtype(x_nchw.dtype).itemsize
    # Sublane packing: f32 pads C to x8, bf16 to x16, int8 to x32.
    pack = max(1, 32 // (itemsize * 8)) * 8
    c_pad = _round_up(C, pack)

    # Lane-dim tile: multiple of 128, sized so one (padded-C) block is
    # ~target_block_bytes.
    t_cap = max(128, (target_block_bytes // max(1, c_pad * itemsize)) // 128 * 128)
    t_hw = min(t_cap, _round_up(HW, 128))
    # v7x megacore: with B == 1 make sure the spatial axis yields >= 2 tiles.
    if B == 1 and HW > 128:
        t_hw = min(t_hw, _round_up(_cdiv(HW, 2), 128))
    n_hw = _cdiv(HW, t_hw)

    # Explicit VMEM budget: 2x(in) + 2x(out) double-buffered blocks + weight,
    # padded-C accounted, plus headroom; capped under v7x's 64 MiB physical VMEM.
    block_bytes = c_pad * t_hw * itemsize
    weight_bytes = c_pad * 128 * 4
    required = 4 * block_bytes + 2 * weight_bytes
    vmem_limit = int(min(48 * 1024 * 1024, max(required + (2 << 20), 16 << 20)))

    w_c1 = weight.reshape(C, 1).astype(jnp.float32)   # per-channel conv weight (sublane column)
    b_1 = bias.reshape(1).astype(jnp.float32)         # bias scalar -> SMEM

    out_flat = pl.pallas_call(
        _spatial_attention_kernel,
        out_shape=jax.ShapeDtypeStruct((B, C, HW), x_nchw.dtype),
        grid=(B, n_hw),
        in_specs=[
            pl.BlockSpec((pl.Squeezed(), C, t_hw), lambda b, s: (b, 0, s)),  # x tile
            pl.BlockSpec((C, 1), lambda b, s: (0, 0)),                       # conv weight (constant block)
            pl.BlockSpec(memory_space=pltpu.MemorySpace.SMEM),               # bias scalar in SMEM
        ],
        out_specs=pl.BlockSpec((pl.Squeezed(), C, t_hw), lambda b, s: (b, 0, s)),
        compiler_params=pltpu.CompilerParams(
            dimension_semantics=("parallel", "parallel"),
            vmem_limit_bytes=vmem_limit,
        ),
    )(x_flat, w_c1, b_1)

    return out_flat.reshape(B, C, H, W)


if __name__ == "__main__":
    key = jax.random.PRNGKey(0)
    kx, kw, kb = jax.random.split(key, 3)

    B, C, H, W = 2, 4, 16, 16
    x = jax.random.normal(kx, (B, C, H, W), dtype=jnp.float32)

    # Deterministic synthetic parameters for Conv2d(C, 1, kernel_size=1).
    weight = jax.random.normal(kw, (1, C, 1, 1), dtype=jnp.float32) * 0.1
    bias = jax.random.normal(kb, (1,), dtype=jnp.float32) * 0.1

    out = jax.block_until_ready(spatial_attention(x, weight, bias))

    # Plain-JAX reference of the PyTorch forward.
    act_ref = jnp.einsum("bchw,c->bhw", x, weight.reshape(C)) + bias[0]
    ref = x * act_ref[:, None, :, :]
    assert out.shape == (B, C, H, W)
    assert jnp.allclose(out, ref, atol=1e-5, rtol=1e-5)

    print("KERNEL_OK")
</pallas_src>

<mosaic_0001>
module attributes {stable_mosaic.version = 11 : i64} {
  func.func @_spatial_attention_kernel(%arg0: i32, %arg1: i32, %arg2: memref<1x4x256xf32, #tpu.memory_space<vmem>>, %arg3: memref<4x1xf32, #tpu.memory_space<vmem>>, %arg4: memref<1xf32, #tpu.memory_space<smem>>, %arg5: memref<1x4x256xf32, #tpu.memory_space<vmem>>) attributes {dimension_semantics = [#tpu.dimension_semantics<parallel>, #tpu.dimension_semantics<parallel>], iteration_bounds = array<i64: 2, 1>, scalar_prefetch = 0 : i64, scratch_operands = 0 : i64, tpu.core_type = #tpu.core_type<tc>, window_params = [{transform_indices = @transform_0, window_bounds = array<i64: 1, 4, 256>}, {pipeline_mode = #tpu.pipeline_mode<synchronous>, transform_indices = @transform_1, window_bounds = array<i64: 4, 1>}, {transform_indices = @transform_2, window_bounds = array<i64: 1>}, {transform_indices = @transform_3, window_bounds = array<i64: 1, 4, 256>}]} {
    %c0 = arith.constant 0 : index
    %c0_0 = arith.constant 0 : index
    %c0_1 = arith.constant 0 : index
    %0 = vector.load %arg2[%c0, %c0_0, %c0_1] : memref<1x4x256xf32, #tpu.memory_space<vmem>>, vector<1x4x256xf32>
    %1 = vector.shape_cast %0 : vector<1x4x256xf32> to vector<4x256xf32>
    %c0_2 = arith.constant 0 : index
    %c0_3 = arith.constant 0 : index
    %2 = vector.load %arg3[%c0_2, %c0_3] : memref<4x1xf32, #tpu.memory_space<vmem>>, vector<4x1xf32>
    %c0_4 = arith.constant 0 : index
    %3 = memref.load %arg4[%c0_4] : memref<1xf32, #tpu.memory_space<smem>>
    %4 = vector.broadcast %2 : vector<4x1xf32> to vector<4x256xf32>
    %5 = arith.mulf %1, %4 : vector<4x256xf32>
    %cst = arith.constant dense<0.000000e+00> : vector<256xf32>
    %6 = vector.multi_reduction <add>, %5, %cst [0] : vector<4x256xf32> to vector<256xf32>
    %7 = vector.shape_cast %6 : vector<256xf32> to vector<1x256xf32>
    %8 = vector.broadcast %3 : f32 to vector<1x256xf32>
    %9 = arith.addf %7, %8 : vector<1x256xf32>
    %10 = vector.broadcast %9 : vector<1x256xf32> to vector<4x256xf32>
    %11 = arith.mulf %1, %10 : vector<4x256xf32>
    %c0_5 = arith.constant 0 : index
    %c0_6 = arith.constant 0 : index
    %c0_7 = arith.constant 0 : index
    %12 = vector.load %arg5[%c0_5, %c0_6, %c0_7] : memref<1x4x256xf32, #tpu.memory_space<vmem>>, vector<1x4x256xf32>
    %13 = vector.shape_cast %12 : vector<1x4x256xf32> to vector<4x256xf32>
    %14 = vector.shape_cast %11 : vector<4x256xf32> to vector<1x4x256xf32>
    tpu.vector_store %arg5[%c0_5, %c0_6, %c0_7], %14 {strides = array<i32>} : memref<1x4x256xf32, #tpu.memory_space<vmem>>, vector<1x4x256xf32>,
    return
  }
  func.func @transform_0(%arg0: i32, %arg1: i32) -> (i32, i32, i32) {
    %c0_i32 = arith.constant 0 : i32
    %c0_i32_0 = arith.constant 0 : i32
    return %arg0, %c0_i32, %arg1 : i32, i32, i32
  }
  func.func @transform_1(%arg0: i32, %arg1: i32) -> (i32, i32) {
    %c0_i32 = arith.constant 0 : i32
    %c0_i32_0 = arith.constant 0 : i32
    %c0_i32_1 = arith.constant 0 : i32
    return %c0_i32, %c0_i32_0 : i32, i32
  }
  func.func @transform_2(%arg0: i32, %arg1: i32) -> i32 {
    %c0_i32 = arith.constant 0 : i32
    %c0_i32_0 = arith.constant 0 : i32
    return %c0_i32 : i32
  }
  func.func @transform_3(%arg0: i32, %arg1: i32) -> (i32, i32, i32) {
    %c0_i32 = arith.constant 0 : i32
    %c0_i32_0 = arith.constant 0 : i32
    return %arg0, %c0_i32, %arg1 : i32, i32, i32
  }
}

</mosaic_0001>

<bundles_post_ra>
// kernel: tpu_custom_call.1
= control target key start
LH: loop header
LB: loop body
LE: loop exit
PB: predicated region body
PF: predicated region fallthrough
CT: control target
= control target key end

     0   :  { %s712_s0 = inlined_call_operand.hbm [shape: f32[2,4,256], index: 0, kind: input, shape index: {}]   ;;  %s713_s1 = inlined_call_operand.vmem [shape: f32[4,1], index: 1, kind: input, shape index: {}]   ;;  %s714_s2 = inlined_call_operand.<no memory space> [shape: f32[1], index: 2, kind: input, shape index: {}]   ;;  %s715_s3 = inlined_call_operand.hbm [shape: f32[2,4,256], index: 3, kind: output, shape index: {}]  }
   0x1   :  { %8 = sst [smem:[#allocation2]] %s714_s2 }
   0x2   :  { %9 = vsyncpa [#allocation4], 0 }
   0x3   :  { %11 = vsyncpa [#allocation4 + $0x1], 0 }
   0x4   :  { %12 = vsyncpa [#allocation5], 0 }
   0x5   :  { %14 = vsyncpa [#allocation5 + $0x1], 0  ;;  %s571_s14 = smov 0   ;;  %s573_s15 = smov 0  }
   0x6   :  { %s575_s16 = smov 0   ;;  %s577_s17 = smov 0  }
   0x7   :  { %s579_s18 = smov 0   ;;  %s581_s19 = smov 0  }
   0x8 LB: > { %s352_s2 = sadd.s32 4294967295, %s542_s19   ;;  %s353_s20 = sadd.s32 4294967294, %s542_s19   ;;  %s542_s19 = sphi %s581_s19, %s20_s19   ;;  %s538_s18 = sphi %s579_s18, %s727_s18   ;;  %s534_s17 = sphi %s577_s17, %s726_s17   ;;  %s530_s16 = sphi %s575_s16, %s725_s16   ;;  %s526_s15 = sphi %s573_s15, %s724_s15   ;;  %s522_s14 = sphi %s571_s14, %s723_s14  }
   0x9   : > { %s32_s21 = sadd.s32 1, %s538_s18  ;;  %s41_s22 = sadd.s32 1, %s530_s16 }
   0xa   : > { %p34_p0 = scmp.ge.s32.totalorder %s32_s21, 2  ;;  %p48_p1 = scmp.ne.s32.totalorder %s530_s16, %s526_s15 }
   0xb   : > { %p49_p2 = scmp.eq.s32.totalorder %s542_s19, 0  ;;  %p54_p3 = scmp.ne.s32.totalorder %s526_s15, %s522_s14 }
   0xc   : > { %s729_s21 = smov (%p34_p0, %s32_s21), 0  ;;  %p55_p5 = scmp.eq.s32.totalorder %s352_s2, 0 }
   0xd   : > { %p612_p4 = por %p49_p2, %p48_p1  ;;  %s36_s24 = ssub.s32 %s538_s18, %s729_s21 }
   0xe   : > { %p122_p6 = scmp.eq.s32.totalorder %s352_s2, 1  ;;  %p39_p7 = scmp.eq.s32.totalorder %s36_s24, 0 }
   0xf   : > { %p618_p8 = por %p55_p5, %p54_p3  ;;  %p128_p10 = scmp.eq.s32.totalorder %s353_s20, 1 }
  0x10   : > { %p622_p9 = por %p122_p6, %p48_p1  ;;  %p381_p13 = scmp.lt.s32.totalorder %s542_s19, 2 }
  0x11   : > { %s627_s27 = scalar_select %p39_p7, %s530_s16, %s41_s22  }
  0x12   : > { %p629_p11 = por %p128_p10, %p54_p3  ;;  %s154_s29 = sand.u32 1, %s530_s16  }
  0x13   : > { %s356_s30 = sshll.u32 %s154_s29, 3  ;;  %s367_s4 = sshll.u32 %s538_s18, 7 }
  0x14   : > { %s719_s28 = scalar_select %p629_p11, 1, 0 }
  0x15   : > { %s166_s7 = scalar_lea.hbm %s712_s0, %s367_s4  ;;  %s158_s8 = scalar_lea.vmem [#allocation3], %s356_s30 }
  0x16   : > { %s168_s9 = sshll.u32 %s158_s8, 4  ;;  %p642_p0 = pnand %p381_p13, %p612_p4  ;;  %s169_s9 = int_to_ptr.vmem [resolvable:$true] %s168_s9 }
  0x17   : > { %p359_p1 = scmp.ge.s32.totalorder %s542_s19, 1  ;;  %p173_p2 = scmp.lt.s32.totalorder %s542_s19, 3 }
  0x18   : > { %s155_s11 = scalar_lea.sflag [#allocation4], %s154_s29  ;;  %p436_p3 = pneg %p642_p0 }
  0x19   : > { %s447_s12 = scalar_lea.vmem %s169_s9, 128  ;;  %s544_s13 = smov [#allocation3]  }
  0x1a   : > { %p448_p5 = scmp.ne.s32.totalorder %s169_s9, %s447_s12  ;;  %s452_s2 = sshll.u32 %s544_s13, 4  ;;  %s453_s2 = int_to_ptr.vmem [resolvable:$false] %s452_s2 }
  0x1b   : > { %s454_s20 = scalar_lea.vmem %s453_s2, 256  ;;  %p455_p10 = scmp.lt.s32.totalorder %s169_s9, %s453_s2 }
  0x1c   : > { %p450_p6 = pnand %p448_p5, %p436_p3  ;;  %p456_p12 = scmp.lt.s32.totalorder %s454_s20, %s447_s12 }
  0x1e   : > { %p451_p7 = pneg %p450_p6  ;;  %p457_p4 = por %p456_p12, %p455_p10 }
  0x20   : > { %p458_p13 = pnand %p457_p4, %p451_p7 }
  0x22   : > { %461 = shalt.err (!%p458_p13)
}
  0x23   : > { %376 = dma.hbm_to_vmem [thread:$0]  (!%p642_p0), %s166_s7, 128, %s169_s9, %s155_s11  }
  0x24   : > { %p174_p11 = pnand %p359_p1, %p173_p2 }
  0x25   : > { %s657_s22 = sand.u32 (!%p174_p11), 1, %s526_s15  }
  0x26   : > { %177 = sbr.rel (%p174_p11) target bundleno = 208 (0xd0), region = 32  ;;  %s360_s23 = sshll.u32 (!%p174_p11), %s657_s22, 3 }
  0x27   : > { %s180_s24 = scalar_lea.sflag (!%p174_p11), [#allocation4], %s657_s22  ;;  %s183_s29 = scalar_lea.vmem (!%p174_p11), [#allocation3], %s360_s23 }
  0x2b   : > { %513 = dma.done.wait (%p618_p8), %s180_s24, 128  }
  0x2c   : > { %515 = vsyncadd (%p618_p8), %s180_s24, 4294967168  ;;  %v545_v0 = vmov 0   ;;  %v209_v1 = vld [vmem:[%s713_s1] sm:$0xf]  ;;  %v546_v2 = vmov 839922192   ;;  %v218_v4 = vlaneseq }
  0x2d   : > { %433 = vset.pattern.permute.xlu0 %v545_v0  ;;  %v216_v3 = vunpack.c.l.s4 %v546_v2  ;;  %v208_v9 = vld [vmem:[%s183_s29] sm:$0xff]  ;;  %vm227_vm0 = vcmask 1043456   ;;  %s210_s25 = sld [smem:[#allocation2]]  ;;  %s368_s5 = sshll.u32 %s534_s17, 7 }
  0x2e   : > { %213 = vperm.xlu0 %433, %v209_v1   ;;  %v219_v6 = vshrl.u32 %v218_v4, 7  ;;  %s205_s6 = scalar_lea.vmem [#allocation6], %s360_s23  ;;  %s266_s10 = scalar_lea.hbm %s715_s3, %s368_s5 }
  0x2f   : > { %v217_v5 = vunpack.c.0.s8 %v216_v3  ;;  %s268_s7 = sshll.u32 %s205_s6, 4  ;;  %s252_s11 = scalar_lea.sflag [#allocation5], %s657_s22  ;;  %s269_s7 = int_to_ptr.vmem [resolvable:$true] %s268_s7 }
  0x30   : > { %s462_s12 = scalar_lea.vmem %s269_s7, 128  ;;  %s547_s13 = smov [#allocation6]  }
  0x31   : > { %v220_v7 = vsub.s32 %v217_v5, %v219_v6  ;;  %p463_p8 = scmp.ne.s32.totalorder %s269_s7, %s462_s12  ;;  %s466_s2 = sshll.u32 %s547_s13, 4  ;;  %s467_s2 = int_to_ptr.vmem [resolvable:$false] %s466_s2 }
  0x32   : > { %s468_s17 = scalar_lea.vmem %s467_s2, 256  ;;  %p469_p0 = scmp.lt.s32.totalorder %s269_s7, %s467_s2 }
  0x33   : > { %v242_v26 = vstv %s210_s25  ;;  %p464_p11 = pnand %p463_p8, %p622_p9  ;;  %p470_p1 = scmp.lt.s32.totalorder %s468_s17, %s462_s12 }
  0x35   : > { %p465_p12 = pneg %p464_p11  ;;  %p471_p2 = por %p470_p1, %p469_p0 }
  0x37   : > { %p472_p3 = pnand %p471_p2, %p465_p12 }
  0xa9   : > { %v214_v8 = vpop.permute.xlu0 %213 }
  0xaa   : > { %v221_v10 = vrot.slane %v214_v8, %v220_v7 }
  0xac   : > { %v223_v11 = vmul.f32 %v221_v10, %v208_v9 }
  0xae   : > { %v225_v12 = vcombine.high %v223_v11, %v223_v11  ;;  %v228_v13 = vsel %vm227_vm0, %v223_v11, 0.0 }
  0xaf   : > { %v229_v14 = vrot.slane %v228_v13, 4 }
  0xb0   : > { %v235_v15 = vsel %vm227_vm0, %v225_v12, 0.0 }
  0xb1   : > { %v230_v16 = vadd.f32 %v229_v14, %v228_v13  ;;  %v236_v17 = vrot.slane %v235_v15, 4 }
  0xb3   : > { %v231_v18 = vrot.slane %v230_v16, 2  ;;  %v237_v19 = vadd.f32 %v236_v17, %v235_v15 }
  0xb5   : > { %v232_v20 = vadd.f32 %v231_v18, %v230_v16  ;;  %v238_v21 = vrot.slane %v237_v19, 2 }
  0xb7   : > { %v233_v22 = vrot.slane %v232_v20, 1  ;;  %v239_v23 = vadd.f32 %v238_v21, %v237_v19 }
  0xb9   : > { %v234_v24 = vadd.f32 %v233_v22, %v232_v20  ;;  %v240_v25 = vrot.slane %v239_v23, 1 }
  0xbb   : > { %v241_v27 = vadd.f32 %v240_v25, %v239_v23  ;;  %v243_v28 = vadd.f32 %v242_v26, %v234_v24 }
  0xbd   : > { %v244_v29 = vadd.f32 %v242_v26, %v241_v27 }
  0xbf   : > { %v247_v30 = vcombine.low %v243_v28, %v244_v29 }
  0xc1   : > { %v249_v31 = vmul.f32 %v247_v30, %v208_v9 }
  0xc3   : > { %250 = vst [vmem:[%s205_s6] sm:$0xff] %v249_v31 }
  0xc4   : > { %475 = shalt.err (!%p472_p3)
}
  0xc5   : > { %s476_s20 = scalar_lea.hbm %s266_s10, 128  ;;  %s480_s24 = scalar_lea.hbm %s715_s3, 256 }
  0xc6   : > { %p477_p5 = scmp.ne.s32.totalorder %s266_s10, %s476_s20  ;;  %p481_p10 = scmp.lt.s32.totalorder %s266_s10, %s715_s3 }
  0xc7   : > { %p482_p4 = scmp.lt.s32.totalorder %s480_s24, %s476_s20 }
  0xc8   : > { %p478_p6 = pnand %p477_p5, %p622_p9 }
  0xc9   : > { %p483_p13 = por %p482_p4, %p481_p10 }
  0xca   : > { %p479_p7 = pneg %p478_p6 }
  0xcc   : > { %p484_p8 = pnand %p483_p13, %p479_p7 }
  0xce   : > { %487 = shalt.err (!%p484_p8)
}
  0xcf   : > { %371 = dma.vmem_to_hbm [thread:$0]  (%p622_p9), %s269_s7, 128, %s266_s10, %s252_s11  }
  0xd0 PF: > { %s280_s4 = sand.u32 1, %s522_s14   ;;  %p721_p11 = scmp.ne.s32.totalorder %s719_s28, 0 }
  0xd1   : > { %p722_p12 = scmp.ge.s32.totalorder %s542_s19, 2  ;;  %s281_s25 = scalar_lea.sflag [#allocation5], %s280_s4 }
  0xd3   : > { %p378_p0 = pnand %p722_p12, %p721_p11 }
  0xd5   : > { %p379_p1 = pneg %p378_p0 }
  0xd7   : > { %517 = dma.done.wait (%p379_p1), %s281_s25, 128  }
  0xd8   : > { %519 = vsyncadd (%p379_p1), %s281_s25, 4294967168  ;;  %s20_s19 = sadd.s32 1, %s542_s19   ;;  %s723_s14 = smov %s526_s15 }
  0xd9   : > { %p17_p2 = scmp.ge.s32.totalorder %s20_s19, 4   ;;  %s724_s15 = smov %s530_s16 }
  0xda   : > { %s725_s16 = smov %s627_s27  ;;  %s726_s17 = smov %s538_s18 }
  0xdb   : > { %s727_s18 = smov %s729_s21  ;;  %19 = sbr.rel (!%p17_p2) target bundleno = 8 (0x8), region = 77 }
  0xe0   :  { %286 = vsyncpa [#allocation4], 1 }
  0xe1   :  { %288 = vsyncpa [#allocation4 + $0x1], 1 }
  0xe2   :  { %289 = vsyncpa [#allocation5], 1 }
  0xe3   :  { %291 = vsyncpa [#allocation5 + $0x1], 1 }

</bundles_post_ra>
